<compile_context>
chip_gen: v5e
topology: v5e:2x2
jax: 0.10.0
libtpu: 0.0.40
codegen_flags: <defaults>
</compile_context>

<pallas_src>
import functools
import math

import jax
import jax.numpy as jnp
from jax.experimental import pallas as pl
from jax.experimental.pallas import tpu as pltpu

# Safe on v7x (64 MiB physical); can be raised toward ~96 MiB on v5e/v6e (128 MiB).
_VMEM_LIMIT = 48 * 1024 * 1024


def _pick_tile(dim, max_tile, align):
    """Largest tile <= max_tile that divides dim and is align-aligned (else full dim)."""
    if dim <= max_tile:
        return dim
    t = (max_tile // align) * align
    while t >= align:
        if dim % t == 0:
            return t
        t -= align
    return dim


# ---------------------------------------------------------------------------
# Tiled linear:  o = act(x @ w + b)
# ---------------------------------------------------------------------------

def _linear_kernel(x_ref, w_ref, b_ref, o_ref, acc_ref, *, act):
    @pl.when(pl.program_id(2) == 0)
    def _():
        acc_ref[...] = jnp.zeros(acc_ref.shape, jnp.float32)

    acc_ref[...] += jnp.dot(x_ref[...], w_ref[...],
                            preferred_element_type=jnp.float32)

    @pl.when(pl.program_id(2) == pl.num_programs(2) - 1)
    def _():
        y = acc_ref[...] + b_ref[...].astype(jnp.float32)
        if act == "relu":
            y = jnp.maximum(y, 0.0)
        elif act == "gelu":  # exact (erf) GELU, as in BERT
            y = 0.5 * y * (1.0 + jax.lax.erf(y * (1.0 / math.sqrt(2.0))))
        o_ref[...] = y.astype(o_ref.dtype)


def linear(x, w, b, act="none", out_dtype=jnp.bfloat16,
           tm_max=512, tn_max=512, tk_max=512):
    M, K = x.shape
    Kw, N = w.shape
    assert K == Kw
    tm = _pick_tile(M, tm_max, 16)    # 16-aligned: two bf16 rows per sublane
    tn = _pick_tile(N, tn_max, 128)
    tk = _pick_tile(K, tk_max, 128)
    grid = (M // tm, N // tn, K // tk)
    return pl.pallas_call(
        functools.partial(_linear_kernel, act=act),
        grid=grid,
        in_specs=[pl.BlockSpec((tm, tk), lambda i, j, k: (i, k)),
                  pl.BlockSpec((tk, tn), lambda i, j, k: (k, j)),
                  pl.BlockSpec((1, tn), lambda i, j, k: (0, j))],
        out_specs=pl.BlockSpec((tm, tn), lambda i, j, k: (i, j)),
        out_shape=jax.ShapeDtypeStruct((M, N), out_dtype),
        scratch_shapes=[pltpu.VMEM((tm, tn), jnp.float32)],
        compiler_params=pltpu.CompilerParams(
            dimension_semantics=("parallel", "parallel", "arbitrary"),
            vmem_limit_bytes=_VMEM_LIMIT),
        cost_estimate=pl.CostEstimate(
            flops=2 * M * N * K, transcendentals=0,
            bytes_accessed=2 * (M * K + K * N + M * N)),
    )(x, w, b.reshape(1, N))


# ---------------------------------------------------------------------------
# Tiled linear with fused residual-add + LayerNorm in the finalize:
#   o = LayerNorm(x @ w + b + res) * g + lb          (tn == N == hidden)
# ---------------------------------------------------------------------------

def _linear_res_ln_kernel(x_ref, w_ref, b_ref, res_ref, g_ref, lb_ref,
                          o_ref, acc_ref, *, eps):
    @pl.when(pl.program_id(1) == 0)
    def _():
        acc_ref[...] = jnp.zeros(acc_ref.shape, jnp.float32)

    acc_ref[...] += jnp.dot(x_ref[...], w_ref[...],
                            preferred_element_type=jnp.float32)

    @pl.when(pl.program_id(1) == pl.num_programs(1) - 1)
    def _():
        y = (acc_ref[...] + b_ref[...].astype(jnp.float32)
             + res_ref[...].astype(jnp.float32))
        mean = jnp.mean(y, axis=-1, keepdims=True)
        var = jnp.mean(jnp.square(y - mean), axis=-1, keepdims=True)
        yn = (y - mean) * jax.lax.rsqrt(var + eps)
        o_ref[...] = (yn * g_ref[...].astype(jnp.float32)
                      + lb_ref[...].astype(jnp.float32)).astype(o_ref.dtype)


def linear_res_ln(x, w, b, res, g, lb, eps=1e-12, out_dtype=jnp.bfloat16,
                  tm_max=512, tk_max=512):
    M, K = x.shape
    Kw, N = w.shape
    assert K == Kw and res.shape == (M, N)
    tm = _pick_tile(M, tm_max, 16)
    tk = _pick_tile(K, tk_max, 128)
    grid = (M // tm, K // tk)
    # res / g / lb index_maps are independent of k -> Pallas fetches them once per i.
    return pl.pallas_call(
        functools.partial(_linear_res_ln_kernel, eps=eps),
        grid=grid,
        in_specs=[pl.BlockSpec((tm, tk), lambda i, k: (i, k)),
                  pl.BlockSpec((tk, N), lambda i, k: (k, 0)),
                  pl.BlockSpec((1, N), lambda i, k: (0, 0)),
                  pl.BlockSpec((tm, N), lambda i, k: (i, 0)),
                  pl.BlockSpec((1, N), lambda i, k: (0, 0)),
                  pl.BlockSpec((1, N), lambda i, k: (0, 0))],
        out_specs=pl.BlockSpec((tm, N), lambda i, k: (i, 0)),
        out_shape=jax.ShapeDtypeStruct((M, N), out_dtype),
        scratch_shapes=[pltpu.VMEM((tm, N), jnp.float32)],
        compiler_params=pltpu.CompilerParams(
            dimension_semantics=("parallel", "arbitrary"),
            vmem_limit_bytes=_VMEM_LIMIT),
        cost_estimate=pl.CostEstimate(
            flops=2 * M * N * K, transcendentals=0,
            bytes_accessed=2 * (M * K + K * N + 2 * M * N)),
    )(x, w, b.reshape(1, N), res, g.reshape(1, N), lb.reshape(1, N))


# ---------------------------------------------------------------------------
# Embedding sum + LayerNorm.  pos_emb is read directly (no (B*S,H) broadcast slab):
# index_map i -> (i % (S // tm), 0), with tm dividing S.
# ---------------------------------------------------------------------------

def _emb_ln_kernel(we_ref, te_ref, pe_ref, g_ref, b_ref, o_ref, *, eps):
    x = (we_ref[...].astype(jnp.float32) + te_ref[...].astype(jnp.float32)
         + pe_ref[...].astype(jnp.float32))
    mean = jnp.mean(x, axis=-1, keepdims=True)
    var = jnp.mean(jnp.square(x - mean), axis=-1, keepdims=True)
    y = (x - mean) * jax.lax.rsqrt(var + eps)
    o_ref[...] = (y * g_ref[...].astype(jnp.float32)
                  + b_ref[...].astype(jnp.float32)).astype(o_ref.dtype)


def embed_layernorm(we, te, pos_emb, S, g, b, eps=1e-12,
                    out_dtype=jnp.bfloat16, tm_max=1024):
    M, H = we.shape
    tm = _pick_tile(S, min(tm_max, S), 16)      # tm divides S (and hence M = B*S)
    n_s = S // tm
    row_spec = pl.BlockSpec((tm, H), lambda i: (i, 0))
    pos_spec = pl.BlockSpec((tm, H), lambda i: (i % n_s, 0))
    vec_spec = pl.BlockSpec((1, H), lambda i: (0, 0))
    return pl.pallas_call(
        functools.partial(_emb_ln_kernel, eps=eps),
        grid=(M // tm,),
        in_specs=[row_spec, row_spec, pos_spec, vec_spec, vec_spec],
        out_specs=row_spec,
        out_shape=jax.ShapeDtypeStruct((M, H), out_dtype),
        compiler_params=pltpu.CompilerParams(
            dimension_semantics=("parallel",),
            vmem_limit_bytes=_VMEM_LIMIT),
    )(we, te, pos_emb, g.reshape(1, H), b.reshape(1, H))


# ---------------------------------------------------------------------------
# Flash attention over (batch, head, kv-chunk); Q/K/V sliced from the QKV slab.
# mask_bias = (1 - mask) * -1e4 is precomputed once outside and kept VMEM-resident.
# ---------------------------------------------------------------------------

def _flash_attn_kernel(q_ref, k_ref, v_ref, mask_ref, o_ref,
                       m_scr, l_scr, acc_scr, *, scale, n_kv):
    b = pl.program_id(0)
    kv = pl.program_id(2)

    @pl.when(kv == 0)
    def _():
        m_scr[...] = jnp.full(m_scr.shape, -jnp.inf, jnp.float32)
        l_scr[...] = jnp.zeros(l_scr.shape, jnp.float32)
        acc_scr[...] = jnp.zeros(acc_scr.shape, jnp.float32)

    # scores (S_q, tkv): bf16 MXU matmul, f32 accumulation
    s = jax.lax.dot_general(q_ref[...], k_ref[...],
                            (((1,), (1,)), ((), ())),
                            preferred_element_type=jnp.float32) * scale

    # key-side additive padding bias (precomputed): row (b*n_kv + kv)
    s = s + mask_ref[pl.ds(b * n_kv + kv, 1), :]

    m_prev = m_scr[...]
    m_new = jnp.maximum(m_prev, jnp.max(s, axis=-1, keepdims=True))
    alpha = jnp.exp(m_prev - m_new)
    p = jnp.exp(s - m_new)
    l_scr[...] = alpha * l_scr[...] + jnp.sum(p, axis=-1, keepdims=True)
    acc_scr[...] = alpha * acc_scr[...] + jax.lax.dot_general(
        p.astype(v_ref.dtype), v_ref[...],
        (((1,), (0,)), ((), ())), preferred_element_type=jnp.float32)
    m_scr[...] = m_new

    @pl.when(kv == pl.num_programs(2) - 1)
    def _():
        o_ref[...] = (acc_scr[...] *
                      pl.reciprocal(l_scr[...], approx=True)).astype(o_ref.dtype)


def flash_attention(qkv, mask_bias, *, B, S, NH, HD,
                    kv_tile_max=512, kv_align=128):
    """qkv: (B*S, 3*NH*HD) laid out [Q | K | V]; mask_bias: (B, S) f32 additive bias."""
    M, three_h = qkv.shape
    H = NH * HD
    assert three_h == 3 * H and M == B * S
    assert HD % 128 == 0, "head_dim must be lane-aligned (pad heads to 128)"
    tkv = S if S <= kv_tile_max else _pick_tile(S, kv_tile_max, kv_align)
    n_kv = S // tkv
    scale = 1.0 / math.sqrt(HD)

    # row (b*n_kv + kv) holds the bias for kv-chunk kv of batch b (kept VMEM-resident)
    bias_r = mask_bias.reshape(B * n_kv, tkv)

    return pl.pallas_call(
        functools.partial(_flash_attn_kernel, scale=scale, n_kv=n_kv),
        grid=(B, NH, n_kv),
        in_specs=[
            pl.BlockSpec((S, HD), lambda b, h, kv: (b, h)),                        # Q
            pl.BlockSpec((tkv, HD), lambda b, h, kv: (b * n_kv + kv, NH + h)),     # K
            pl.BlockSpec((tkv, HD), lambda b, h, kv: (b * n_kv + kv, 2 * NH + h)), # V
            pl.BlockSpec((B * n_kv, tkv), lambda b, h, kv: (0, 0)),                # bias
        ],
        out_specs=pl.BlockSpec((S, HD), lambda b, h, kv: (b, h)),
        out_shape=jax.ShapeDtypeStruct((M, H), jnp.bfloat16),
        scratch_shapes=[pltpu.VMEM((S, 1), jnp.float32),
                        pltpu.VMEM((S, 1), jnp.float32),
                        pltpu.VMEM((S, HD), jnp.float32)],
        compiler_params=pltpu.CompilerParams(
            dimension_semantics=("parallel", "parallel", "arbitrary"),
            vmem_limit_bytes=_VMEM_LIMIT),
        cost_estimate=pl.CostEstimate(
            flops=4 * B * NH * S * S * HD,
            transcendentals=B * NH * S * S,
            bytes_accessed=2 * (3 * M * H + M * H)),
    )(qkv, qkv, qkv, bias_r)


# ---------------------------------------------------------------------------
# Parameters (synthetic, deterministic) and forward glue
# ---------------------------------------------------------------------------

def init_params(key, cfg):
    H, I, T, L = cfg["hidden"], cfg["intermediate"], cfg["tags"], cfg["layers"]
    V, P = cfg["vocab"], cfg["max_pos"]
    T_pad = ((T + 127) // 128) * 128

    def nrm(k, shape):  # bf16 storage, f32 init scale 0.02
        return (0.02 * jax.random.normal(k, shape, jnp.float32)).astype(jnp.bfloat16)

    keys = iter(jax.random.split(key, 4 + 4 * L))
    params = {
        "word_emb": nrm(next(keys), (V, H)),
        "pos_emb": nrm(next(keys), (P, H)),
        "type_emb": nrm(next(keys), (2, H)),
        "emb_ln_g": jnp.ones((H,), jnp.float32),
        "emb_ln_b": jnp.zeros((H,), jnp.float32),
        "layers": [],
    }
    wd = nrm(next(keys), (H, T))
    params["wd_p"] = jnp.pad(wd, ((0, 0), (0, T_pad - T)))   # lane-dense head weight
    params["bd_p"] = jnp.zeros((T_pad,), jnp.float32)
    for _ in range(L):
        params["layers"].append({
            "w_qkv": nrm(next(keys), (H, 3 * H)),  # fused [Q|K|V] projection
            "b_qkv": jnp.zeros((3 * H,), jnp.float32),
            "wo": nrm(next(keys), (H, H)), "bo": jnp.zeros((H,), jnp.float32),
            "ln1_g": jnp.ones((H,), jnp.float32), "ln1_b": jnp.zeros((H,), jnp.float32),
            "w1": nrm(next(keys), (H, I)), "b1": jnp.zeros((I,), jnp.float32),
            "w2": nrm(next(keys), (I, H)), "b2": jnp.zeros((H,), jnp.float32),
            "ln2_g": jnp.ones((H,), jnp.float32), "ln2_b": jnp.zeros((H,), jnp.float32),
        })
    return params


def crf_model_forward(params, ids, mask, token_type_ids, cfg):
    """Mirrors CRFModel.forward: bert(...)[0] -> Dropout(identity) -> Linear -> ReLU."""
    B, S = ids.shape
    H, NH, HD, T = cfg["hidden"], cfg["heads"], cfg["head_dim"], cfg["tags"]
    kv_tile = cfg.get("kv_tile", 512)
    kv_align = cfg.get("kv_align", 128)

    # Embeddings: gathers are plain-JAX glue (no rectangular BlockSpec equivalent);
    # 3-way sum + LayerNorm run fused in one Pallas kernel, pos table read in place.
    we = jnp.take(params["word_emb"], ids.reshape(-1), axis=0)                # (B*S, H)
    te = jnp.take(params["type_emb"], token_type_ids.reshape(-1), axis=0)     # (B*S, H)
    x2d = embed_layernorm(we, te, params["pos_emb"], S,
                          params["emb_ln_g"], params["emb_ln_b"])

    # additive key-side mask bias, computed once for all layers
    mask_bias = (1.0 - mask.astype(jnp.float32)) * -10000.0                   # (B, S)

    for lp in params["layers"]:
        qkv = linear(x2d, lp["w_qkv"], lp["b_qkv"],
                     tn_max=1024, tk_max=1024)                                # (M, 3H)
        ctx = flash_attention(qkv, mask_bias, B=B, S=S, NH=NH, HD=HD,
                              kv_tile_max=kv_tile, kv_align=kv_align)         # (M, H)
        # wo projection with fused residual + LayerNorm
        x2d = linear_res_ln(ctx, lp["wo"], lp["bo"], x2d, lp["ln1_g"], lp["ln1_b"])

        h = linear(x2d, lp["w1"], lp["b1"], act="gelu",
                   tn_max=1024, tk_max=1024)                                  # (M, I)
        # w2 projection with fused residual + LayerNorm
        x2d = linear_res_ln(h, lp["w2"], lp["b2"], x2d, lp["ln2_g"], lp["ln2_b"],
                            tk_max=1024)

    # "dence" head: Dropout (identity in eval) -> Linear(H, tags) -> ReLU.
    # Run lane-dense (tags padded to 128 in the weight), slice back to tags outside.
    logits_p = linear(x2d, params["wd_p"], params["bd_p"], act="relu",
                      out_dtype=jnp.float32)                                  # (M, 128)
    return logits_p[:, :T].reshape(B, S, T)


# ---------------------------------------------------------------------------
if __name__ == "__main__":
    # head_dim=128 keeps attention tiles lane-dense; kv_tile/kv_align=8 only to
    # exercise the online-softmax multi-chunk path at this tiny S (never benchmark so).
    cfg = dict(hidden=256, heads=2, head_dim=128, intermediate=512,
               layers=2, vocab=100, max_pos=32, tags=5, kv_tile=8, kv_align=8)

    key = jax.random.PRNGKey(0)
    kp, ki = jax.random.split(key, 2)

    B, S = 2, 16
    params = init_params(kp, cfg)
    ids = jax.random.randint(ki, (B, S), 0, cfg["vocab"], dtype=jnp.int32)
    # batch 0 fully attended; batch 1 padded over the last 6 tokens
    mask = jnp.concatenate(
        [jnp.ones((1, S), jnp.int32),
         jnp.concatenate([jnp.ones((1, 10), jnp.int32),
                          jnp.zeros((1, 6), jnp.int32)], axis=1)], axis=0)
    token_type_ids = jnp.zeros((B, S), dtype=jnp.int32)

    out = crf_model_forward(params, ids, mask, token_type_ids, cfg)
    out = jax.block_until_ready(out)

    assert out.shape == (B, S, cfg["tags"])
    assert out.dtype == jnp.float32
    assert bool(jnp.all(jnp.isfinite(out)))
    assert bool(jnp.all(out >= 0.0))  # ReLU output
    print("KERNEL_OK")
</pallas_src>

<mosaic_0001>
module attributes {stable_mosaic.version = 11 : i64} {
  func.func @_emb_ln_kernel(%arg0: i32, %arg1: memref<16x256xbf16, #tpu.memory_space<vmem>>, %arg2: memref<16x256xbf16, #tpu.memory_space<vmem>>, %arg3: memref<16x256xbf16, #tpu.memory_space<vmem>>, %arg4: memref<1x256xf32, #tpu.memory_space<vmem>>, %arg5: memref<1x256xf32, #tpu.memory_space<vmem>>, %arg6: memref<16x256xbf16, #tpu.memory_space<vmem>>) attributes {dimension_semantics = [#tpu.dimension_semantics<parallel>], iteration_bounds = array<i64: 2>, scalar_prefetch = 0 : i64, scratch_operands = 0 : i64, tpu.core_type = #tpu.core_type<tc>, window_params = [{transform_indices = @transform_0, window_bounds = array<i64: 16, 256>}, {transform_indices = @transform_1, window_bounds = array<i64: 16, 256>}, {transform_indices = @transform_2, window_bounds = array<i64: 16, 256>}, {pipeline_mode = #tpu.pipeline_mode<synchronous>, transform_indices = @transform_3, window_bounds = array<i64: 1, 256>}, {pipeline_mode = #tpu.pipeline_mode<synchronous>, transform_indices = @transform_4, window_bounds = array<i64: 1, 256>}, {transform_indices = @transform_5, window_bounds = array<i64: 16, 256>}]} {
    %c0 = arith.constant 0 : index
    %c0_0 = arith.constant 0 : index
    %0 = vector.load %arg1[%c0, %c0_0] : memref<16x256xbf16, #tpu.memory_space<vmem>>, vector<16x256xbf16>
    %1 = arith.extf %0 : vector<16x256xbf16> to vector<16x256xf32>
    %c0_1 = arith.constant 0 : index
    %c0_2 = arith.constant 0 : index
    %2 = vector.load %arg2[%c0_1, %c0_2] : memref<16x256xbf16, #tpu.memory_space<vmem>>, vector<16x256xbf16>
    %3 = arith.extf %2 : vector<16x256xbf16> to vector<16x256xf32>
    %4 = arith.addf %1, %3 : vector<16x256xf32>
    %c0_3 = arith.constant 0 : index
    %c0_4 = arith.constant 0 : index
    %5 = vector.load %arg3[%c0_3, %c0_4] : memref<16x256xbf16, #tpu.memory_space<vmem>>, vector<16x256xbf16>
    %6 = arith.extf %5 : vector<16x256xbf16> to vector<16x256xf32>
    %7 = arith.addf %4, %6 : vector<16x256xf32>
    %cst = arith.constant dense<0.000000e+00> : vector<16xf32>
    %8 = vector.multi_reduction <add>, %7, %cst [1] : vector<16x256xf32> to vector<16xf32>
    %9 = vector.shape_cast %8 : vector<16xf32> to vector<16x1xf32>
    %cst_5 = arith.constant 2.560000e+02 : f32
    %10 = vector.broadcast %cst_5 : f32 to vector<16x1xf32>
    %11 = arith.divf %9, %10 : vector<16x1xf32>
    %12 = vector.broadcast %11 : vector<16x1xf32> to vector<16x256xf32>
    %13 = arith.subf %7, %12 : vector<16x256xf32>
    %14 = arith.mulf %13, %13 : vector<16x256xf32>
    %cst_6 = arith.constant dense<0.000000e+00> : vector<16xf32>
    %15 = vector.multi_reduction <add>, %14, %cst_6 [1] : vector<16x256xf32> to vector<16xf32>
    %16 = vector.shape_cast %15 : vector<16xf32> to vector<16x1xf32>
    %cst_7 = arith.constant 2.560000e+02 : f32
    %17 = vector.broadcast %cst_7 : f32 to vector<16x1xf32>
    %18 = arith.divf %16, %17 : vector<16x1xf32>
    %19 = vector.broadcast %11 : vector<16x1xf32> to vector<16x256xf32>
    %20 = arith.subf %7, %19 : vector<16x256xf32>
    %cst_8 = arith.constant 9.99999996E-13 : f32
    %21 = vector.broadcast %cst_8 : f32 to vector<16x1xf32>
    %22 = arith.addf %18, %21 : vector<16x1xf32>
    %23 = math.rsqrt %22 : vector<16x1xf32>
    %24 = vector.broadcast %23 : vector<16x1xf32> to vector<16x256xf32>
    %25 = arith.mulf %20, %24 : vector<16x256xf32>
    %c0_9 = arith.constant 0 : index
    %c0_10 = arith.constant 0 : index
    %26 = vector.load %arg4[%c0_9, %c0_10] : memref<1x256xf32, #tpu.memory_space<vmem>>, vector<1x256xf32>
    %27 = vector.broadcast %26 : vector<1x256xf32> to vector<16x256xf32>
    %28 = arith.mulf %25, %27 : vector<16x256xf32>
    %c0_11 = arith.constant 0 : index
    %c0_12 = arith.constant 0 : index
    %29 = vector.load %arg5[%c0_11, %c0_12] : memref<1x256xf32, #tpu.memory_space<vmem>>, vector<1x256xf32>
    %30 = vector.broadcast %29 : vector<1x256xf32> to vector<16x256xf32>
    %31 = arith.addf %28, %30 : vector<16x256xf32>
    %32 = arith.truncf %31 : vector<16x256xf32> to vector<16x256xbf16>
    %c0_13 = arith.constant 0 : index
    %c0_14 = arith.constant 0 : index
    %33 = vector.load %arg6[%c0_13, %c0_14] : memref<16x256xbf16, #tpu.memory_space<vmem>>, vector<16x256xbf16>
    tpu.vector_store %arg6[%c0_13, %c0_14], %32 {strides = array<i32>} : memref<16x256xbf16, #tpu.memory_space<vmem>>, vector<16x256xbf16>,
    return
  }
  func.func @transform_0(%arg0: i32) -> (i32, i32) {
    %c0_i32 = arith.constant 0 : i32
    %c0_i32_0 = arith.constant 0 : i32
    return %arg0, %c0_i32 : i32, i32
  }
  func.func @transform_1(%arg0: i32) -> (i32, i32) {
    %c0_i32 = arith.constant 0 : i32
    %c0_i32_0 = arith.constant 0 : i32
    return %arg0, %c0_i32 : i32, i32
  }
  func.func @transform_2(%arg0: i32) -> (i32, i32) {
    %c1_i32 = arith.constant 1 : i32
    %c0_i32 = arith.constant 0 : i32
    %0 = arith.cmpi eq, %c1_i32, %c0_i32 : i32
    %c1_i32_0 = arith.constant 1 : i32
    %1 = arith.select %0, %c1_i32_0, %c1_i32 : i32
    %2 = arith.remsi %arg0, %1 : i32
    %c0_i32_1 = arith.constant 0 : i32
    %3 = arith.cmpi ne, %2, %c0_i32_1 : i32
    %c0_i32_2 = arith.constant 0 : i32
    %4 = arith.cmpi slt, %2, %c0_i32_2 : i32
    %c0_i32_3 = arith.constant 0 : i32
    %5 = arith.cmpi slt, %1, %c0_i32_3 : i32
    %6 = arith.xori %4, %5 : i1
    %7 = arith.andi %6, %3 : i1
    %8 = arith.addi %2, %1 : i32
    %9 = arith.select %7, %8, %2 : i32
    %c0_i32_4 = arith.constant 0 : i32
    %c0_i32_5 = arith.constant 0 : i32
    return %9, %c0_i32_4 : i32, i32
  }
  func.func @transform_3(%arg0: i32) -> (i32, i32) {
    %c0_i32 = arith.constant 0 : i32
    %c0_i32_0 = arith.constant 0 : i32
    %c0_i32_1 = arith.constant 0 : i32
    return %c0_i32, %c0_i32_0 : i32, i32
  }
  func.func @transform_4(%arg0: i32) -> (i32, i32) {
    %c0_i32 = arith.constant 0 : i32
    %c0_i32_0 = arith.constant 0 : i32
    %c0_i32_1 = arith.constant 0 : i32
    return %c0_i32, %c0_i32_0 : i32, i32
  }
  func.func @transform_5(%arg0: i32) -> (i32, i32) {
    %c0_i32 = arith.constant 0 : i32
    %c0_i32_0 = arith.constant 0 : i32
    return %arg0, %c0_i32 : i32, i32
  }
}

</mosaic_0001>

<bundles_post_ra>
// kernel: tpu_custom_call.1
= control target key start
LH: loop header
LB: loop body
LE: loop exit
PB: predicated region body
PF: predicated region fallthrough
CT: control target
= control target key end

     0   :  { %s1102_s0 = inlined_call_operand.hbm [shape: bf16[32,256], index: 0, kind: input, shape index: {}]   ;;  %s1103_s1 = inlined_call_operand.hbm [shape: bf16[32,256], index: 1, kind: input, shape index: {}]   ;;  %s1104_s2 = inlined_call_operand.hbm [shape: bf16[32,256], index: 2, kind: input, shape index: {}]   ;;  %s1105_s3 = inlined_call_operand.vmem [shape: f32[1,256], index: 3, kind: input, shape index: {}]   ;;  %s1106_s4 = inlined_call_operand.hbm [shape: f32[1,256], index: 4, kind: input, shape index: {}]   ;;  %s1107_s5 = inlined_call_operand.hbm [shape: bf16[32,256], index: 5, kind: output, shape index: {}]  }
   0x1   :  { %1112 = sst [smem:[#allocation17_spill]] %s1102_s0 }
   0x2   :  { %1113 = sst [smem:[#allocation18_spill]] %s1104_s2 }
   0x3   :  { %1114 = sst [smem:[#allocation19_spill]] %s1106_s4 }
   0x4   :  { %10 = vsyncpa [#allocation3], 0 }
   0x5   :  { %12 = vsyncpa [#allocation3 + $0x1], 0 }
   0x6   :  { %13 = vsyncpa [#allocation6], 0 }
   0x7   :  { %15 = vsyncpa [#allocation6 + $0x1], 0 }
   0x8   :  { %16 = vsyncpa [#allocation9], 0 }
   0x9   :  { %17 = vsyncpa [#allocation4], 0 }
   0xa   :  { %19 = vsyncpa [#allocation4 + $0x1], 0  ;;  %s913_s18 = smov 0   ;;  %s915_s19 = smov 0  }
   0xb   :  { %s917_s20 = smov 0   ;;  %s919_s21 = smov 0  }
   0xc LB: > { %s934_s22 = sadd.s32 4294967295, %s874_s21   ;;  %s562_s23 = sadd.s32 4294967294, %s874_s21   ;;  %s874_s21 = sphi %s919_s21, %s1131_s21   ;;  %s870_s20 = sphi %s917_s20, %s1130_s20   ;;  %s866_s19 = sphi %s915_s19, %s1129_s19   ;;  %s862_s18 = sphi %s913_s18, %s1128_s18  }
   0xd   : > { %p45_p0 = scmp.ne.s32.totalorder %s866_s19, %s862_s18  ;;  %p46_p1 = scmp.eq.s32.totalorder %s934_s22, 0 }
   0xe   : > { %p158_p2 = scmp.eq.s32.totalorder %s934_s22, 1  ;;  %p164_p3 = scmp.eq.s32.totalorder %s562_s23, 1 }
   0xf   : > { %p943_p4 = por %p46_p1, %p45_p0  ;;  %p563_p5 = scmp.ge.s32.totalorder %s874_s21, 1 }
  0x10   : > { %p948_p6 = por %p164_p3, %p45_p0  ;;  %p171_p7 = scmp.lt.s32.totalorder %s874_s21, 3 }
  0x11   : > { %s1117_s2 = sld [smem:[#allocation18_spill]]  ;;  %s876_s30 = smov [#allocation7]  }
  0x12   : > { %p956_p8 = pnand %p563_p5, %p171_p7  ;;  %s184_s6 = sshll.u32 %s876_s30, 4  ;;  %s185_s6 = int_to_ptr.vmem [resolvable:$true] %s184_s6 }
  0x13   : > { %s1119_s4 = sld [smem:[#allocation19_spill]]  ;;  %s1108_s10 = smov 128  }
  0x14   : > { %p607_p9 = pneg %p956_p8  ;;  %s1110_s11 = smov 8  }
  0x15   : > { %s879_s12 = smov [#allocation8]   ;;  %s972_s14 = sadd.s32 1, %s874_s21  }
  0x16   : > { %p608_p10 = pnand %p607_p9, %p46_p1  ;;  %s202_s13 = sshll.u32 %s879_s12, 4  ;;  %s203_s13 = int_to_ptr.vmem [resolvable:$true] %s202_s13 }
  0x17   : > { %s182_s28 = sshll.u32 %s1117_s2, 4  ;;  %s32_s15 = sadd.s32 1, %s870_s20  ;;  %s183_s28 = int_to_ptr.hbm [resolvable:$true] %s182_s28 }
  0x18   : > { %610 = dma.hbm_to_vmem [thread:$0]  (!%p608_p10), %s183_s28, 256, %s185_s6, [#allocation6], %s1108_s10, %s1108_s10, %s1110_s11  }
  0x19   : > { %s200_s9 = sshll.u32 %s1119_s4, 4  ;;  %s29_s16 = ssub.s32 %s874_s21, %s972_s14  ;;  %s201_s9 = int_to_ptr.hbm [resolvable:$true] %s200_s9 }
  0x1a   : > { %613 = dma.hbm_to_vmem [thread:$0]  (!%p608_p10), %s201_s9, 32, %s203_s13, [#allocation9]  }
  0x1b   : > { %p39_p12 = scmp.ne.s32.totalorder %s870_s20, %s866_s19  ;;  %p30_p13 = scmp.eq.s32.totalorder %s29_s16, 0 }
  0x1c   : > { %p40_p0 = scmp.eq.s32.totalorder %s874_s21, 0  ;;  %p627_p5 = scmp.lt.s32.totalorder %s874_s21, 2 }
  0x1d   : > { %p982_p3 = por %p158_p2, %p39_p12  ;;  %s213_s26 = sand.u32 1, %s870_s20  }
  0x1e   : > { %s988_s23 = scalar_select %p30_p13, %s870_s20, %s32_s15  }
  0x1f   : > { %p41_p7 = por %p40_p0, %p39_p12  ;;  %s991_s27 = sshll.u32 %s213_s26, 4 }
  0x20   : > { %1121 = sst [smem:[#allocation16_spill]] %s988_s23  ;;  %s588_s28 = sshll.u32 %s874_s21, 4 }
  0x21   : > { %s1122_s0 = sld [smem:[#allocation17_spill]]  ;;  %s217_s8 = scalar_lea.vmem [#allocation2], %s991_s27 }
  0x22   : > { %s226_s9 = sshll.u32 %s217_s8, 4  ;;  %p998_p2 = pnand %p627_p5, %p41_p7  ;;  %s227_s9 = int_to_ptr.vmem [resolvable:$true] %s226_s9 }
  0x23   : > { %s246_s10 = scalar_lea.hbm %s1103_s1, %s588_s28  ;;  %s214_s2 = scalar_lea.sflag [#allocation3], %s213_s26 }
  0x24   : > { %s247_s11 = sshll.u32 %s246_s10, 4  ;;  %p740_p10 = pneg %p998_p2  ;;  %s248_s11 = int_to_ptr.hbm [resolvable:$true] %s247_s11 }
  0x27   : > { %s223_s7 = scalar_lea.hbm %s1122_s0, %s588_s28  ;;  %s743_s8 = scalar_lea.hbm %s1122_s0, 32 }
  0x28   : > { %s224_s12 = sshll.u32 %s223_s7, 4  ;;  %s225_s12 = int_to_ptr.hbm [resolvable:$true] %s224_s12 }
  0x29   : > { %s736_s4 = sshra.s32 %s225_s12, 4  ;;  %s737_s4 = int_to_ptr.hbm [resolvable:$true] %s736_s4 }
  0x2a   : > { %s738_s30 = scalar_lea.hbm %s737_s4, 16  ;;  %p744_p0 = scmp.lt.s32.totalorder %s737_s4, %s1122_s0 }
  0x2b   : > { %p739_p9 = scmp.ne.s32.totalorder %s737_s4, %s738_s30  ;;  %p745_p5 = scmp.lt.s32.totalorder %s743_s8, %s738_s30 }
  0x2d   : > { %p741_p12 = pnand %p740_p10, %p739_p9  ;;  %p746_p7 = por %p745_p5, %p744_p0 }
  0x2f   : > { %p742_p13 = pneg %p741_p12 }
  0x31   : > { %p747_p11 = pnand %p746_p7, %p742_p13 }
  0x33   : > { %750 = shalt.err (!%p747_p11)
}
  0x34   : > { %s1124_s10 = smov 8   ;;  %s1125_s26 = smov 128  }
  0x35   : > { %617 = dma.hbm_to_vmem [thread:$0]  (!%p998_p2), %s225_s12, 256, %s227_s9, %s214_s2, %s1125_s26, %s1125_s26, %s1124_s10  }
  0x36   : > { %s240_s28 = scalar_lea.vmem [#allocation5], %s991_s27  ;;  %s236_s7 = sand.u32 1, %s874_s21  }
  0x37   : > { %s249_s6 = sshll.u32 %s240_s28, 4  ;;  %s237_s15 = scalar_lea.sflag [#allocation6], %s236_s7  ;;  %s250_s6 = int_to_ptr.vmem [resolvable:$true] %s249_s6 }
  0x38   : > { %s766_s4 = sshra.s32 %s248_s11, 4  ;;  %s773_s0 = scalar_lea.hbm %s1103_s1, 32  ;;  %s767_s4 = int_to_ptr.hbm [resolvable:$true] %s766_s4 }
  0x39   : > { %s768_s30 = scalar_lea.hbm %s767_s4, 16  ;;  %p774_p13 = scmp.lt.s32.totalorder %s767_s4, %s1103_s1 }
  0x3a   : > { %p769_p9 = scmp.ne.s32.totalorder %s767_s4, %s768_s30  ;;  %p775_p0 = scmp.lt.s32.totalorder %s773_s0, %s768_s30 }
  0x3c   : > { %p771_p11 = pnand %p769_p9, %p740_p10  ;;  %p776_p5 = por %p775_p0, %p774_p13 }
  0x3e   : > { %p772_p12 = pneg %p771_p11 }
  0x40   : > { %p777_p7 = pnand %p776_p5, %p772_p12 }
  0x42   : > { %780 = shalt.err (!%p777_p7)
}
  0x43   : > { %620 = dma.hbm_to_vmem [thread:$0]  (!%p998_p2), %s248_s11, 256, %s250_s6, %s237_s15, %s1125_s26, %s1125_s26, %s1124_s10  }
  0x44   : > { %261 = sbr.rel (%p956_p8) target bundleno = 373 (0x175), region = 40  ;;  %s1040_s27 = sand.u32 (!%p956_p8), 1, %s866_s19  }
  0x45   : > { %s1043_s23 = sshll.u32 (!%p956_p8), %s1040_s27, 4  ;;  %s264_s0 = scalar_lea.sflag (!%p956_p8), [#allocation3], %s1040_s27 }
  0x46   : > { %s267_s9 = scalar_lea.vmem (!%p956_p8), [#allocation2], %s1043_s23 }
  0x49   : > { %841 = dma.done.wait (%p943_p4), %s264_s0, 256  }
  0x4a   : > { %843 = vsyncadd (%p943_p4), %s264_s0, 4294967040  ;;  %s273_s29 = sand.u32 1, %s934_s22   ;;  %s277_s12 = scalar_lea.vmem [#allocation5], %s1043_s23 }
  0x4b   : > { %s274_s11 = scalar_lea.sflag [#allocation6], %s273_s29 }
  0x4c   : > { %845 = dma.done.wait (%p943_p4), %s274_s11, 256  }
  0x4d   : > { %847 = vsyncadd (%p943_p4), %s274_s11, 4294967040 }
  0x4e   : > { %849 = dma.done.wait (%p46_p1), [#allocation6], 256  }
  0x4f   : > { %851 = vsyncadd (%p46_p1), [#allocation6], 4294967040 }
  0x50   : > { %853 = dma.done.wait (%p46_p1), [#allocation9], 32  }
  0x51   : > { %855 = vsyncadd (%p46_p1), [#allocation9], 4294967264  ;;  %v323_v0 = vld [vmem:[%s267_s9] sm:$0xff]  ;;  %v324_v7 = vld [vmem:[%s267_s9 + $0x8] sm:$0xff]  ;;  %v880_v28 = vmov 256.0   ;;  %s592_s10 = sshll.u32 %s934_s22, 4 }
  0x52   : > { %v329_v1 = vld [vmem:[%s277_s12] sm:$0xff]  ;;  %v325_v3 = vunpack.c.l.bf16 %v323_v0  ;;  %v326_v4 = vunpack.c.h.bf16 %v323_v0  ;;  %v330_v8 = vld [vmem:[%s277_s12 + $0x8] sm:$0xff]  ;;  %v327_v12 = vunpack.c.l.bf16 %v324_v7  ;;  %v328_v13 = vunpack.c.h.bf16 %v324_v7  ;;  %s443_s6 = scalar_lea.hbm %s1107_s5, %s592_s10  ;;  %s319_s7 = scalar_lea.vmem [#allocation10], %s1043_s23 }
  0x53   : > { %v339_v2 = vld [vmem:[#allocation7] sm:$0xff]  ;;  %v331_v5 = vunpack.c.l.bf16 %v329_v1  ;;  %v332_v6 = vunpack.c.h.bf16 %v329_v1  ;;  %v340_v9 = vld [vmem:[#allocation7 + $0x8] sm:$0xff]  ;;  %v333_v16 = vunpack.c.l.bf16 %v330_v8  ;;  %v334_v17 = vunpack.c.h.bf16 %v330_v8  ;;  %v416_v62 = vld [vmem:[#allocation8] sm:$0x3]  ;;  %s444_s15 = sshll.u32 %s319_s7, 4  ;;  %s446_s4 = sshll.u32 %s443_s6, 4  ;;  %s445_s15 = int_to_ptr.vmem [resolvable:$true] %s444_s15  ;;  %s447_s4 = int_to_ptr.hbm [resolvable:$true] %s446_s4 }
  0x54   : > { %v341_v10 = vunpack.c.l.bf16 %v339_v2  ;;  %v342_v11 = vunpack.c.h.bf16 %v339_v2  ;;  %v343_v18 = vunpack.c.l.bf16 %v340_v9  ;;  %v344_v19 = vunpack.c.h.bf16 %v340_v9  ;;  %v406_v59 = vld [vmem:[%s1105_s3] sm:$0x3]  ;;  %s431_s22 = scalar_lea.sflag [#allocation4], %s1040_s27  ;;  %s810_s30 = sshra.s32 %s447_s4, 4  ;;  %s811_s30 = int_to_ptr.hbm [resolvable:$true] %s810_s30 }
  0x55   : > { %v335_v14 = vadd.f32 %v331_v5, %v325_v3  ;;  %v336_v15 = vadd.f32 %v332_v6, %v326_v4  ;;  %v337_v22 = vadd.f32 %v333_v16, %v327_v12  ;;  %v338_v23 = vadd.f32 %v334_v17, %v328_v13  ;;  %s812_s8 = scalar_lea.hbm %s811_s30, 16  ;;  %s816_s23 = scalar_lea.hbm %s1107_s5, 32 }
  0x56   : > { %670 = vrcp.f32 %v880_v28  ;;  %v408_v1 = vperm.slane %v406_v59, 0  ;;  %v409_v2 = vperm.slane %v406_v59, 1  ;;  %v418_v5 = vperm.slane %v416_v62, 0  ;;  %p813_p1 = scmp.ne.s32.totalorder %s811_s30, %s812_s8  ;;  %p817_p2 = scmp.lt.s32.totalorder %s811_s30, %s1107_s5 }
  0x57   : > { %v345_v20 = vadd.f32 %v341_v10, %v335_v14  ;;  %v346_v21 = vadd.f32 %v342_v11, %v336_v15  ;;  %v347_v25 = vadd.f32 %v343_v18, %v337_v22  ;;  %v348_v26 = vadd.f32 %v344_v19, %v338_v23  ;;  %p818_p10 = scmp.lt.s32.totalorder %s816_s23, %s812_s8 }
  0x58   : > { %v419_v6 = vperm.slane %v416_v62, 1  ;;  %p814_p4 = pnand %p813_p1, %p982_p3 }
  0x59   : > { %v349_v24 = vadd.f32 %v346_v21, %v345_v20  ;;  %v352_v27 = vadd.f32 %v348_v26, %v347_v25  ;;  %p819_p9 = por %p818_p10, %p817_p2 }
  0x5a   : > { %p815_p8 = pneg %p814_p4 }
  0x5b   : > { %350 = vadd.xlane.f32.xlu0 %v349_v24 }
  0x5c   : > { %v671_v29 = vpop.eup %670  ;;  %p820_p11 = pnand %p819_p9, %p815_p8 }
  0x5d   : > { %v356_v30 = vmul.f32 256.0, %v671_v29  ;;  %vm360_vm0 = vweird.f32 %v671_v29 }
  0x5f   : > { %v357_v31 = vsub.f32 1.0, %v356_v30 }
  0x61   : > { %v358_v32 = vmul.f32 %v671_v29, %v357_v31 }
  0x63   : > { %353 = vadd.xlane.f32.xlu0 %v352_v27  ;;  %v359_v33 = vadd.f32 %v671_v29, %v358_v32 }
  0x65   : > { %v361_v34 = vsel %vm360_vm0, %v671_v29, %v359_v33 }
  0xce   : > { %v351_v35 = vpop.xlane.xlu0 %350 }
  0xcf   : > { %v362_v36 = vmul.f32 %v361_v34, %v351_v35 }
  0xd1   : > { %v364_v37 = vsub.f32 %v345_v20, %v362_v36  ;;  %v365_v38 = vsub.f32 %v346_v21, %v362_v36 }
  0xd3   : > { %v368_v39 = vmul.f32 %v364_v37, %v364_v37  ;;  %v369_v40 = vmul.f32 %v365_v38, %v365_v38 }
  0xd5   : > { %v372_v41 = vadd.f32 %v369_v40, %v368_v39 }
  0xd6   : > { %v354_v42 = vpop.xlane.xlu0 %353 }
  0xd7   : > { %v363_v43 = vmul.f32 %v361_v34, %v354_v42  ;;  %373 = vadd.xlane.f32.xlu1 %v372_v41 }
  0xd9   : > { %v366_v44 = vsub.f32 %v347_v25, %v363_v43  ;;  %v367_v45 = vsub.f32 %v348_v26, %v363_v43 }
  0xdb   : > { %v370_v46 = vmul.f32 %v366_v44, %v366_v44  ;;  %v371_v47 = vmul.f32 %v367_v45, %v367_v45 }
  0xdd   : > { %v375_v48 = vadd.f32 %v371_v47, %v370_v46 }
  0xdf   : > { %376 = vadd.xlane.f32.xlu1 %v375_v48 }
 0x14a   : > { %v374_v49 = vpop.xlane.xlu1 %373 }
 0x14b   : > { %v378_v50 = vmul.f32 %v374_v49, %v361_v34 }
 0x14d   : > { %v380_v51 = vadd.f32 1e-12, %v378_v50 }
 0x14f   : > { %672 = vrsqrt.f32 %v380_v51  ;;  %vm388_vm2 = vweird.f32 %v380_v51 }
 0x152   : > { %v377_v52 = vpop.xlane.xlu1 %376 }
 0x153   : > { %v379_v53 = vmul.f32 %v377_v52, %v361_v34 }
 0x155   : > { %v673_v54 = vpop.eup %672  ;;  %v381_v55 = vadd.f32 1e-12, %v379_v53 }
 0x156   : > { %v383_v56 = vmul.f32 %v673_v54, %v380_v51  ;;  %vm389_vm1 = vweird.f32 %v673_v54 }
 0x157   : > { %674 = vrsqrt.f32 %v381_v55  ;;  %vm390_vm3 = vmor %vm388_vm2, %vm389_vm1  ;;  %vm398_vm5 = vweird.f32 %v381_v55 }
 0x158   : > { %v384_v57 = vmul.f32 %v673_v54, %v383_v56 }
 0x15a   : > { %v385_v58 = vmul.f32 0.5, %v384_v57 }
 0x15c   : > { %v386_v60 = vsub.f32 1.5, %v385_v58 }
 0x15d   : > { %v675_v61 = vpop.eup %674 }
 0x15e   : > { %v387_v63 = vmul.f32 %v673_v54, %v386_v60  ;;  %v393_v0 = vmul.f32 %v675_v61, %v381_v55  ;;  %vm399_vm4 = vweird.f32 %v675_v61 }
 0x15f   : > { %vm400_vm6 = vmor %vm398_vm5, %vm399_vm4 }
 0x160   : > { %v391_v3 = vsel %vm390_vm3, %v673_v54, %v387_v63  ;;  %v394_v4 = vmul.f32 %v675_v61, %v393_v0 }
 0x161   : > { %v402_v7 = vmul.f32 %v391_v3, %v364_v37  ;;  %v403_v8 = vmul.f32 %v391_v3, %v365_v38 }
 0x162   : > { %v395_v9 = vmul.f32 0.5, %v394_v4 }
 0x163   : > { %v412_v10 = vmul.f32 %v408_v1, %v402_v7  ;;  %v413_v11 = vmul.f32 %v409_v2, %v403_v8 }
 0x164   : > { %v396_v12 = vsub.f32 1.5, %v395_v9 }
 0x165   : > { %v422_v13 = vadd.f32 %v418_v5, %v412_v10  ;;  %v423_v14 = vadd.f32 %v419_v6, %v413_v11 }
 0x166   : > { %v397_v15 = vmul.f32 %v675_v61, %v396_v12 }
 0x167   : > { %v426_v16 = vpack.c.bf16 %v423_v14, %v422_v13 }
 0x168   : > { %v401_v17 = vsel %vm400_vm6, %v675_v61, %v397_v15 }
 0x169   : > { %v404_v18 = vmul.f32 %v401_v17, %v366_v44  ;;  %v405_v19 = vmul.f32 %v401_v17, %v367_v45  ;;  %428 = vst [vmem:[%s319_s7] sm:$0xff] %v426_v16 }
 0x16b   : > { %v414_v20 = vmul.f32 %v408_v1, %v404_v18  ;;  %v415_v21 = vmul.f32 %v409_v2, %v405_v19 }
 0x16d   : > { %v424_v22 = vadd.f32 %v418_v5, %v414_v20  ;;  %v425_v23 = vadd.f32 %v419_v6, %v415_v21 }
 0x16f   : > { %v427_v24 = vpack.c.bf16 %v425_v23, %v424_v22 }
 0x171   : > { %429 = vst [vmem:[%s319_s7 + $0x8] sm:$0xff] %v427_v24 }
 0x172   : > { %823 = shalt.err (!%p820_p11)
}
 0x173   : > { %s881_s27 = smov 128   ;;  %s882_s29 = smov 8  }
 0x174   : > { %605 = dma.vmem_to_hbm [thread:$0]  (%p982_p3), %s445_s15, 256, %s447_s4, %s431_s22, %s881_s27, %s881_s27, %s882_s29  }
 0x175 PF: > { %s461_s11 = sand.u32 1, %s862_s18   ;;  %p1126_p12 = scmp.ge.s32.totalorder %s874_s21, 2 }
 0x176   : > { %s462_s12 = scalar_lea.sflag [#allocation4], %s461_s11 }
 0x177   : > { %p622_p13 = pnand %p1126_p12, %p948_p6 }
 0x179   : > { %p623_p0 = pneg %p622_p13 }
 0x17b   : > { %857 = dma.done.wait (%p623_p0), %s462_s12, 256  }
 0x17c   : > { %859 = vsyncadd (%p623_p0), %s462_s12, 4294967040  ;;  %s1127_s24 = sld [smem:[#allocation16_spill]]  ;;  %p22_p5 = scmp.ge.s32.totalorder %s972_s14, 4  }
 0x17d   : > { %s1128_s18 = smov %s866_s19  ;;  %s1129_s19 = smov %s870_s20 }
 0x17e   : > { %s1131_s21 = smov %s972_s14  ;;  %24 = sbr.rel (!%p22_p5) target bundleno = 12 (0xc), region = 106 }
 0x182   : > { %s1130_s20 = smov %s1127_s24 }
 0x183   :  { %468 = vsyncpa [#allocation3], 1 }
 0x184   :  { %470 = vsyncpa [#allocation3 + $0x1], 1 }
 0x185   :  { %471 = vsyncpa [#allocation6], 1 }
 0x186   :  { %473 = vsyncpa [#allocation6 + $0x1], 1 }
 0x187   :  { %474 = vsyncpa [#allocation9], 1 }
 0x188   :  { %475 = vsyncpa [#allocation4], 1 }
 0x189   :  { %477 = vsyncpa [#allocation4 + $0x1], 1 }

</bundles_post_ra>
